<compile_context>
chip_gen: v5e
topology: v5e:2x2
jax: 0.10.0
libtpu: 0.0.40
codegen_flags: <defaults>
</compile_context>

<pallas_src>
import math
import functools

import jax
import jax.numpy as jnp
from jax.experimental import pallas as pl
from jax.experimental.pallas import tpu as pltpu


_TARGET_BLOCK_BYTES = 4 * 1024 * 1024     # per x block, counted in real VMEM bytes
_VMEM_LIMIT_BYTES = 32 * 1024 * 1024      # safe on v5e/v6e (128 MiB) and v7x (64 MiB)


def _build_pe_table(d_model: int, max_seq_len: int) -> jnp.ndarray:
    """Element-for-element identical to the PyTorch module's buffer init:
       pe[pos, i]   = sin(pos / 10000**(2*i     / d_model))   (i = 0,2,4,...)
       pe[pos, i+1] = cos(pos / 10000**(2*(i+1) / d_model))
    """
    pos = jnp.arange(max_seq_len, dtype=jnp.float32)[:, None]          # (L, 1)
    i = jnp.arange(0, d_model, 2, dtype=jnp.float32)[None, :]          # (1, D/2) = 0,2,4,...
    sin_vals = jnp.sin(pos / jnp.power(10000.0, 2.0 * i / d_model))
    cos_vals = jnp.cos(pos / jnp.power(10000.0, 2.0 * (i + 1.0) / d_model))
    pe = jnp.zeros((max_seq_len, d_model), dtype=jnp.float32)
    pe = pe.at[:, 0::2].set(sin_vals)
    pe = pe.at[:, 1::2].set(cos_vals)
    return pe


def _pos_enc_kernel(x_ref, pe_ref, o_ref, *, scale):
    # x block: (B, K, tc); pe block: (1, K, tc) -> broadcasts over the batch dim.
    x = x_ref[...].astype(jnp.float32)
    pe = pe_ref[...].astype(jnp.float32)
    o_ref[...] = (x * scale + pe).astype(o_ref.dtype)


def _pick_lane_tile(rows: int, target: int) -> int:
    """Largest multiple-of-128 divisor of `rows` that is <= `target` (>= 128).

    Falls back to the full extent when rows is not a multiple of 128 (legal as
    a full-extent block; only happens for tiny shapes)."""
    if rows % 128 != 0:
        return rows
    units = rows // 128
    target_units = max(1, target // 128)
    best = 1
    d = 1
    while d * d <= units:
        if units % d == 0:
            for cand in (d, units // d):
                if best < cand <= target_units:
                    best = cand
        d += 1
    return best * 128


@functools.partial(jax.jit, static_argnames=("d_model",))
def positional_encoder(x: jnp.ndarray, pe: jnp.ndarray, d_model: int) -> jnp.ndarray:
    """x: (B, S, D).  pe: (max_seq_len, D) float32 table, D == d_model."""
    B, S, D = x.shape
    assert D == d_model
    scale = math.sqrt(d_model)

    pe_slice = pe[:S, :]                      # static slice == self.pe[:, :seq_len]

    # Sublane-dense refold: per-batch row-major flatten, split into K dense
    # sublanes.  K = 8 for 32-bit dtypes, 16 for 16-bit -> fully packed vregs.
    itemsize = jnp.dtype(x.dtype).itemsize
    K = 16 if itemsize == 2 else 8

    flat = S * D
    rows = pl.cdiv(flat, K)
    padded = rows * K

    x2 = x.reshape(B, flat)
    pe2 = pe_slice.reshape(1, flat)
    if padded != flat:                        # rare ragged case: pad once in HBM
        x2 = jnp.pad(x2, ((0, 0), (0, padded - flat)))
        pe2 = jnp.pad(pe2, ((0, 0), (0, padded - flat)))
    x3 = x2.reshape(B, K, rows)
    pe3 = pe2.reshape(1, K, rows)

    # Lane tile: multiple-of-128 divisor of `rows`, sized so one x block is
    # ~_TARGET_BLOCK_BYTES of *actual* VMEM (B * K * tc * itemsize).
    target_tc = max(128, _TARGET_BLOCK_BYTES // (itemsize * B * K))
    tc = _pick_lane_tile(rows, target_tc)
    grid = (rows // tc,)

    kernel = functools.partial(_pos_enc_kernel, scale=scale)
    out3 = pl.pallas_call(
        kernel,
        out_shape=jax.ShapeDtypeStruct((B, K, rows), x.dtype),
        grid=grid,
        in_specs=[
            pl.BlockSpec((B, K, tc), lambda j: (0, 0, j)),
            pl.BlockSpec((1, K, tc), lambda j: (0, 0, j)),
        ],
        out_specs=pl.BlockSpec((B, K, tc), lambda j: (0, 0, j)),
        compiler_params=pltpu.CompilerParams(
            dimension_semantics=("parallel",),
            vmem_limit_bytes=_VMEM_LIMIT_BYTES,
        ),
    )(x3, pe3)

    out = out3.reshape(B, padded)[:, :flat].reshape(B, S, D)
    return out


if __name__ == "__main__":
    d_model = 32
    max_seq_len = 80
    batch, seq = 2, 8

    key = jax.random.PRNGKey(0)
    x = jax.random.normal(key, (batch, seq, d_model), dtype=jnp.float32)

    pe = _build_pe_table(d_model, max_seq_len)

    out = positional_encoder(x, pe, d_model)
    out = jax.block_until_ready(out)

    # Reference check in plain JAX (same formula as the PyTorch module).
    ref = x * math.sqrt(d_model) + pe[None, :seq, :]
    assert out.shape == (batch, seq, d_model)
    assert jnp.allclose(out, ref, atol=1e-5, rtol=1e-5)

    print("KERNEL_OK")
</pallas_src>

<mosaic_0001>
module attributes {stable_mosaic.version = 11 : i64} {
  func.func @_pos_enc_kernel(%arg0: i32, %arg1: memref<2x8x32xf32, #tpu.memory_space<vmem>>, %arg2: memref<1x8x32xf32, #tpu.memory_space<vmem>>, %arg3: memref<2x8x32xf32, #tpu.memory_space<vmem>>) attributes {dimension_semantics = [#tpu.dimension_semantics<parallel>], iteration_bounds = array<i64: 1>, scalar_prefetch = 0 : i64, scratch_operands = 0 : i64, tpu.core_type = #tpu.core_type<tc>, window_params = [{transform_indices = @transform_0, window_bounds = array<i64: 2, 8, 32>}, {transform_indices = @transform_1, window_bounds = array<i64: 1, 8, 32>}, {transform_indices = @transform_2, window_bounds = array<i64: 2, 8, 32>}]} {
    %c0 = arith.constant 0 : index
    %c0_0 = arith.constant 0 : index
    %c0_1 = arith.constant 0 : index
    %0 = vector.load %arg1[%c0, %c0_0, %c0_1] : memref<2x8x32xf32, #tpu.memory_space<vmem>>, vector<2x8x32xf32>
    %c0_2 = arith.constant 0 : index
    %c0_3 = arith.constant 0 : index
    %c0_4 = arith.constant 0 : index
    %1 = vector.load %arg2[%c0_2, %c0_3, %c0_4] : memref<1x8x32xf32, #tpu.memory_space<vmem>>, vector<1x8x32xf32>
    %cst = arith.constant 5.65685415 : f32
    %2 = vector.broadcast %cst : f32 to vector<2x8x32xf32>
    %3 = arith.mulf %0, %2 : vector<2x8x32xf32>
    %4 = vector.broadcast %1 : vector<1x8x32xf32> to vector<2x8x32xf32>
    %5 = arith.addf %3, %4 : vector<2x8x32xf32>
    %c0_5 = arith.constant 0 : index
    %c0_6 = arith.constant 0 : index
    %c0_7 = arith.constant 0 : index
    %6 = vector.load %arg3[%c0_5, %c0_6, %c0_7] : memref<2x8x32xf32, #tpu.memory_space<vmem>>, vector<2x8x32xf32>
    tpu.vector_store %arg3[%c0_5, %c0_6, %c0_7], %5 {strides = array<i32>} : memref<2x8x32xf32, #tpu.memory_space<vmem>>, vector<2x8x32xf32>,
    return
  }
  func.func @transform_0(%arg0: i32) -> (i32, i32, i32) {
    %c0_i32 = arith.constant 0 : i32
    %c0_i32_0 = arith.constant 0 : i32
    %c0_i32_1 = arith.constant 0 : i32
    return %c0_i32, %c0_i32_0, %arg0 : i32, i32, i32
  }
  func.func @transform_1(%arg0: i32) -> (i32, i32, i32) {
    %c0_i32 = arith.constant 0 : i32
    %c0_i32_0 = arith.constant 0 : i32
    %c0_i32_1 = arith.constant 0 : i32
    return %c0_i32, %c0_i32_0, %arg0 : i32, i32, i32
  }
  func.func @transform_2(%arg0: i32) -> (i32, i32, i32) {
    %c0_i32 = arith.constant 0 : i32
    %c0_i32_0 = arith.constant 0 : i32
    %c0_i32_1 = arith.constant 0 : i32
    return %c0_i32, %c0_i32_0, %arg0 : i32, i32, i32
  }
}

</mosaic_0001>

<bundles_post_ra>
// kernel: positional_encoder.1
= control target key start
LH: loop header
LB: loop body
LE: loop exit
PB: predicated region body
PF: predicated region fallthrough
CT: control target
= control target key end

     0   :  { %s99_s0 = inlined_call_operand.vmem [shape: f32[2,8,32], index: 0, kind: input, shape index: {}]   ;;  %s100_s1 = inlined_call_operand.vmem [shape: f32[1,8,32], index: 1, kind: input, shape index: {}]   ;;  %s101_s2 = inlined_call_operand.hbm [shape: f32[2,8,32], index: 2, kind: output, shape index: {}]  }
   0x1   :  { %v12_v0 = vld [vmem:[%s99_s0] sm:$0xff]  ;;  %v13_v2 = vld [vmem:[%s99_s0 + $0x8] sm:$0xff]  ;;  %s28_s17 = sshll.u32 %s101_s2, 4  ;;  %s29_s17 = int_to_ptr.hbm [resolvable:$true] %s28_s17 }
   0x2   :  { %v14_v1 = vld [vmem:[%s100_s1] sm:$0xff]  ;;  %v15_v3 = vmul.f32 5.656854, %v12_v0  ;;  %v16_v4 = vmul.f32 5.656854, %v13_v2 }
   0x3   :  { %7 = vsyncpa [#allocation3], 0  ;;  %vm19_vm0 = vcmask 261120   ;;  %s69_s18 = smov [#allocation2]   ;;  %s70_s1 = smov 128  }
   0x4   :  { %s26_s19 = sshll.u32 %s69_s18, 4  ;;  %v17_v5 = vadd.f32 %v15_v3, %v14_v1  ;;  %v18_v6 = vadd.f32 %v16_v4, %v14_v1  ;;  %s71_s20 = smov 8   ;;  %s27_s19 = int_to_ptr.vmem [resolvable:$true] %s26_s19 }
   0x6   :  { %20 = vst.msk [vmem:[#allocation2] sm:$0xff] %vm19_vm0, %v17_v5 }
   0x7   :  { %21 = vst.msk [vmem:[#allocation2 + $0x8] sm:$0xff] %vm19_vm0, %v18_v6 }
   0x8   :  { %34 = dma.vmem_to_hbm [thread:$0]  %s27_s19, 256, %s29_s17, [#allocation3], %s70_s1, %s70_s1, %s71_s20  }
   0x9   :  { %67 = dma.done.wait [#allocation3], 256  }
   0xa   :  { %68 = vsyncadd [#allocation3], 4294967040 }
   0xb   :  { %39 = vsyncpa [#allocation3], 1 }

</bundles_post_ra>
